<compile_context>
chip_gen: v6e
topology: v6e:2x2x1
jax: 0.10.0
libtpu: 0.0.40
codegen_flags: <defaults>
</compile_context>

<pallas_src>
import functools
import math

import jax
import jax.numpy as jnp
from jax.experimental import pallas as pl
from jax.experimental.pallas import tpu as pltpu


def _round_up(x: int, m: int) -> int:
    return ((x + m - 1) // m) * m


def _vmem_budget_bytes() -> int:
    cap = 64 * 1024 * 1024                      # conservative default (v7x physical)
    try:
        info = pltpu.get_tpu_info()
        cap = int(getattr(info, "vmem_capacity_bytes", cap))
    except Exception:
        pass
    # ~25% headroom; 96 MiB on v5e/v6e (128 MiB), 48 MiB on v7x (64 MiB).
    return min((cap * 3) // 4, 96 * 1024 * 1024)


def _choose_tiling(n: int, c: int, hw: int, kp: int, budget: int):
    """Returns (tb, hw_chunk, hw_padded) fitting the VMEM budget."""
    npad8 = _round_up(max(n, 1), 8)
    fixed = c * kp * 2 + kp * 4                               # bf16 weight + f32 bias

    def cost(tb, hwc):
        return (2 * tb * c * hwc * 4          # double-buffered f32 activation tiles
                + 2 * tb * kp * 4             # double-buffered f32 output tiles
                + tb * c * 4                  # f32 pooled accumulator (scratch)
                + fixed)

    tb_candidates = sorted({min(t, npad8) for t in (1024, 512, 256, 128, 64, 32, 16, 8)},
                           reverse=True)
    # 1) Whole-HW slab per step (single reduction chunk) at the largest tb that fits.
    for tb in tb_candidates:
        if cost(tb, hw) <= budget:
            return tb, hw, hw
    # 2) Chunk the HW reduction (multiples of 128) so tb can stay reasonably large.
    for tb in tb_candidates:
        avail = budget - fixed - 2 * tb * kp * 4 - tb * c * 4
        if avail <= 0:
            continue
        hwc = (avail // (2 * tb * c * 4)) // 128 * 128
        if hwc >= 128:
            return tb, hwc, _round_up(hw, hwc)
    # 3) Last resort.
    return 8, 128, _round_up(hw, 128)


def _decoder_kernel(x_ref, w_ref, b_ref, o_ref, acc_ref, *, inv_hw):
    # x_ref:   (TB, C, HWc) f32   activation tile (HW chunk)
    # w_ref:   (C,  Kp)     bf16  Linear weight, transposed, 0-padded (resident)
    # b_ref:   (1,  Kp)     f32   bias, 0-padded (resident)
    # o_ref:   (TB, Kp)     f32   lane-dense output tile (Kp % 128 == 0)
    # acc_ref: (TB, C)      f32   pooled-sum accumulator (scratch)
    k = pl.program_id(1)

    @pl.when(k == 0)
    def _():
        acc_ref[...] = jnp.zeros_like(acc_ref)

    # Partial spatial sum; f32 accumulation without materializing a cast copy.
    acc_ref[...] += jnp.sum(x_ref[...], axis=-1, dtype=jnp.float32)

    @pl.when(k == pl.num_programs(1) - 1)
    def _():
        pooled = acc_ref[...] * inv_hw                          # mean pool, f32
        y = jnp.dot(pooled.astype(jnp.bfloat16), w_ref[...],
                    preferred_element_type=jnp.float32)         # MXU: bf16 in, f32 out
        o_ref[...] = y + b_ref[...]


def prepare_decoder_params(weight, bias):
    """One-time prep (off the per-forward path): pad classes to a lane-dense
    multiple of 128 and transpose the Linear weight to (C, Kp), unscaled."""
    n_classes, c = weight.shape
    kp = _round_up(n_classes, 128)
    w_mat = jnp.zeros((c, kp), jnp.float32).at[:, :n_classes].set(
        weight.T.astype(jnp.float32)).astype(jnp.bfloat16)
    b_row = jnp.zeros((1, kp), jnp.float32).at[:, :n_classes].set(
        bias.astype(jnp.float32))
    return w_mat, b_row


def resnet_decoder(x_nchw, w_mat, b_row, n_classes):
    """AdaptiveAvgPool2d((1,1)) -> flatten -> Linear (ResnetDecoder.forward)."""
    n, c, h, w = x_nchw.shape
    hw = h * w
    kp = w_mat.shape[1]

    budget = _vmem_budget_bytes()
    tb, hw_chunk, hw_padded = _choose_tiling(n, c, hw, kp, budget)

    # (N, C, H, W) -> (N, C, HW): contiguous reshape; no transpose / cast pass.
    x = x_nchw.reshape(n, c, hw)
    if hw_padded != hw:          # zero-pad the reduction axis (sum unaffected)
        x = jnp.pad(x, ((0, 0), (0, 0), (0, hw_padded - hw)))
    npad = _round_up(n, tb)
    if npad != n:
        x = jnp.pad(x, ((0, npad - n), (0, 0), (0, 0)))

    grid = (npad // tb, hw_padded // hw_chunk)
    kernel = functools.partial(_decoder_kernel, inv_hw=1.0 / float(hw))

    out = pl.pallas_call(
        kernel,
        out_shape=jax.ShapeDtypeStruct((npad, kp), jnp.float32),
        grid=grid,
        in_specs=[
            pl.BlockSpec((tb, c, hw_chunk), lambda i, k: (i, 0, k)),  # activations
            pl.BlockSpec((c, kp), lambda i, k: (0, 0)),               # weight (resident)
            pl.BlockSpec((1, kp), lambda i, k: (0, 0)),               # bias (resident)
        ],
        out_specs=pl.BlockSpec((tb, kp), lambda i, k: (i, 0)),
        scratch_shapes=[pltpu.VMEM((tb, c), jnp.float32)],
        compiler_params=pltpu.CompilerParams(
            dimension_semantics=("parallel", "arbitrary"),
            vmem_limit_bytes=budget,
        ),
    )(x, w_mat, b_row)

    return out[:n, :n_classes]


if __name__ == "__main__":
    key = jax.random.PRNGKey(0)
    kx, kw, kb = jax.random.split(key, 3)

    # ResnetDecoder(in_features=64, n_classes=5) on a small encoder feature map.
    n, c, h, w = 2, 64, 8, 8
    n_classes = 5

    x = jax.random.normal(kx, (n, c, h, w), jnp.float32)                        # NCHW
    weight = jax.random.normal(kw, (n_classes, c), jnp.float32) / math.sqrt(c)  # nn.Linear.weight
    bias = 0.01 * jax.random.normal(kb, (n_classes,), jnp.float32)              # nn.Linear.bias

    w_mat, b_row = prepare_decoder_params(weight, bias)     # one-time prep
    fwd = jax.jit(resnet_decoder, static_argnums=3)
    out = jax.block_until_ready(fwd(x, w_mat, b_row, n_classes))

    assert out.shape == (n, n_classes), out.shape
    assert bool(jnp.all(jnp.isfinite(out)))

    # Reference: mean-pool over H,W then Linear (pure JAX, f32).
    ref = jnp.mean(x, axis=(2, 3)) @ weight.T + bias
    assert bool(jnp.allclose(out, ref, atol=2e-2, rtol=2e-2)), (out, ref)

    print("KERNEL_OK")
</pallas_src>

<mosaic_0001>
module attributes {stable_mosaic.version = 11 : i64} {
  func.func @_decoder_kernel(%arg0: i32, %arg1: i32, %arg2: memref<8x64x64xf32, #tpu.memory_space<vmem>>, %arg3: memref<64x128xbf16, #tpu.memory_space<vmem>>, %arg4: memref<1x128xf32, #tpu.memory_space<vmem>>, %arg5: memref<8x128xf32, #tpu.memory_space<vmem>>, %arg6: memref<8x64xf32, #tpu.memory_space<vmem>>) attributes {dimension_semantics = [#tpu.dimension_semantics<parallel>, #tpu.dimension_semantics<arbitrary>], iteration_bounds = array<i64: 1, 1>, scalar_prefetch = 0 : i64, scratch_operands = 1 : i64, tpu.core_type = #tpu.core_type<tc>, window_params = [{transform_indices = @transform_0, window_bounds = array<i64: 8, 64, 64>}, {pipeline_mode = #tpu.pipeline_mode<synchronous>, transform_indices = @transform_1, window_bounds = array<i64: 64, 128>}, {pipeline_mode = #tpu.pipeline_mode<synchronous>, transform_indices = @transform_2, window_bounds = array<i64: 1, 128>}, {transform_indices = @transform_3, window_bounds = array<i64: 8, 128>}]} {
    %c0_i32 = arith.constant 0 : i32
    %0 = arith.cmpi eq, %arg1, %c0_i32 : i32
    %1 = arith.extui %0 : i1 to i32
    %c0_i32_0 = arith.constant 0 : i32
    %2 = arith.cmpi ne, %1, %c0_i32_0 : i32
    scf.if %2 {
      %cst_9 = arith.constant 0.000000e+00 : f32
      %11 = vector.broadcast %cst_9 : f32 to vector<8x64xf32>
      %c0_10 = arith.constant 0 : index
      %c0_11 = arith.constant 0 : index
      %12 = vector.load %arg6[%c0_10, %c0_11] : memref<8x64xf32, #tpu.memory_space<vmem>>, vector<8x64xf32>
      tpu.vector_store %arg6[%c0_10, %c0_11], %11 {strides = array<i32>} : memref<8x64xf32, #tpu.memory_space<vmem>>, vector<8x64xf32>,
    } else {
    }
    %c0 = arith.constant 0 : index
    %c0_1 = arith.constant 0 : index
    %3 = vector.load %arg6[%c0, %c0_1] : memref<8x64xf32, #tpu.memory_space<vmem>>, vector<8x64xf32>
    %c0_2 = arith.constant 0 : index
    %c0_3 = arith.constant 0 : index
    %c0_4 = arith.constant 0 : index
    %4 = vector.load %arg2[%c0_2, %c0_3, %c0_4] : memref<8x64x64xf32, #tpu.memory_space<vmem>>, vector<8x64x64xf32>
    %cst = arith.constant dense<0.000000e+00> : vector<8x64xf32>
    %5 = vector.multi_reduction <add>, %4, %cst [2] : vector<8x64x64xf32> to vector<8x64xf32>
    %6 = arith.addf %3, %5 : vector<8x64xf32>
    %c0_5 = arith.constant 0 : index
    %c0_6 = arith.constant 0 : index
    %7 = vector.load %arg6[%c0_5, %c0_6] : memref<8x64xf32, #tpu.memory_space<vmem>>, vector<8x64xf32>
    tpu.vector_store %arg6[%c0_5, %c0_6], %6 {strides = array<i32>} : memref<8x64xf32, #tpu.memory_space<vmem>>, vector<8x64xf32>,
    %c0_i32_7 = arith.constant 0 : i32
    %8 = arith.cmpi eq, %arg1, %c0_i32_7 : i32
    %9 = arith.extui %8 : i1 to i32
    %c0_i32_8 = arith.constant 0 : i32
    %10 = arith.cmpi ne, %9, %c0_i32_8 : i32
    scf.if %10 {
      %c0_9 = arith.constant 0 : index
      %c0_10 = arith.constant 0 : index
      %11 = vector.load %arg6[%c0_9, %c0_10] : memref<8x64xf32, #tpu.memory_space<vmem>>, vector<8x64xf32>
      %cst_11 = arith.constant 1.562500e-02 : f32
      %12 = vector.broadcast %cst_11 : f32 to vector<8x64xf32>
      %13 = arith.mulf %11, %12 : vector<8x64xf32>
      %14 = arith.truncf %13 : vector<8x64xf32> to vector<8x64xbf16>
      %c0_12 = arith.constant 0 : index
      %c0_13 = arith.constant 0 : index
      %15 = vector.load %arg3[%c0_12, %c0_13] : memref<64x128xbf16, #tpu.memory_space<vmem>>, vector<64x128xbf16>
      %cst_14 = arith.constant dense<0.000000e+00> : vector<8x128xf32>
      %16 = tpu.matmul %14, %15, %cst_14 {dimension_numbers = #tpu.dot_dimension_numbers<[1], [0], [0], [1], [0, 0, 1, 1], [], []>} : vector<8x64xbf16>, vector<64x128xbf16>, vector<8x128xf32> -> vector<8x128xf32>
      %c0_15 = arith.constant 0 : index
      %c0_16 = arith.constant 0 : index
      %17 = vector.load %arg4[%c0_15, %c0_16] : memref<1x128xf32, #tpu.memory_space<vmem>>, vector<1x128xf32>
      %18 = vector.broadcast %17 : vector<1x128xf32> to vector<8x128xf32>
      %19 = arith.addf %16, %18 : vector<8x128xf32>
      %c0_17 = arith.constant 0 : index
      %c0_18 = arith.constant 0 : index
      %20 = vector.load %arg5[%c0_17, %c0_18] : memref<8x128xf32, #tpu.memory_space<vmem>>, vector<8x128xf32>
      tpu.vector_store %arg5[%c0_17, %c0_18], %19 {strides = array<i32>} : memref<8x128xf32, #tpu.memory_space<vmem>>, vector<8x128xf32>,
    } else {
    }
    return
  }
  func.func @transform_0(%arg0: i32, %arg1: i32) -> (i32, i32, i32) {
    %c0_i32 = arith.constant 0 : i32
    %c0_i32_0 = arith.constant 0 : i32
    return %arg0, %c0_i32, %arg1 : i32, i32, i32
  }
  func.func @transform_1(%arg0: i32, %arg1: i32) -> (i32, i32) {
    %c0_i32 = arith.constant 0 : i32
    %c0_i32_0 = arith.constant 0 : i32
    %c0_i32_1 = arith.constant 0 : i32
    return %c0_i32, %c0_i32_0 : i32, i32
  }
  func.func @transform_2(%arg0: i32, %arg1: i32) -> (i32, i32) {
    %c0_i32 = arith.constant 0 : i32
    %c0_i32_0 = arith.constant 0 : i32
    %c0_i32_1 = arith.constant 0 : i32
    return %c0_i32, %c0_i32_0 : i32, i32
  }
  func.func @transform_3(%arg0: i32, %arg1: i32) -> (i32, i32) {
    %c0_i32 = arith.constant 0 : i32
    %c0_i32_0 = arith.constant 0 : i32
    return %arg0, %c0_i32 : i32, i32
  }
}

</mosaic_0001>

<bundles_post_ra>
// kernel: resnet_decoder.1
= control target key start
LH: loop header
LB: loop body
LE: loop exit
PB: predicated region body
PF: predicated region fallthrough
CT: control target
= control target key end

     0   :  { %vm19_vm0 = vcmask 523264   ;;  %vm354_vm1 = vcmask 130112   ;;  %vm811_vm2 = vmmov 0   ;;  %vm361_vm3 = vcmask 195712   ;;  %s1295_s0 = inlined_call_operand.vmem [shape: f32[8,64,64], index: 0, kind: input, shape index: {}]   ;;  %s1296_s1 = inlined_call_operand.vmem [shape: bf16[64,128], index: 1, kind: input, shape index: {}]   ;;  %s1297_s2 = inlined_call_operand.vmem [shape: f32[1,128], index: 2, kind: input, shape index: {}]   ;;  %s1298_s3 = inlined_call_operand.vmem [shape: f32[8,128], index: 3, kind: output, shape index: {}]  }
   0x1   :  { %v30_v0 = vld [vmem:[%s1295_s0 + $0x40] sm:$0xff]  ;;  %v31_v2 = vld [vmem:[%s1295_s0 + $0x48] sm:$0xff]  ;;  %v32_v8 = vld [vmem:[%s1295_s0 + $0x50] sm:$0xff]  ;;  %vm368_vm4 = vcmask 261312   ;;  %vm375_vm5 = vcmask 326912   ;;  %vm382_vm6 = vcmask 392512  }
   0x2   :  { %v22_v1 = vld [vmem:[%s1295_s0] sm:$0xff]  ;;  %v111_v3 = vsel %vm19_vm0, %v30_v0, 0.0  ;;  %v23_v5 = vld [vmem:[%s1295_s0 + $0x8] sm:$0xff]  ;;  %v114_v6 = vsel %vm19_vm0, %v31_v2, 0.0  ;;  %v24_v9 = vld [vmem:[%s1295_s0 + $0x10] sm:$0xff]  ;;  %v117_v10 = vsel %vm19_vm0, %v32_v8, 0.0 }
   0x3   :  { %v87_v4 = vsel %vm19_vm0, %v22_v1, 0.0  ;;  %112 = vadd.xlane.f32.xlu1 %v111_v3  ;;  %v90_v7 = vsel %vm19_vm0, %v23_v5, 0.0  ;;  %v93_v11 = vsel %vm19_vm0, %v24_v9, 0.0  ;;  %v39_v12 = vld [vmem:[%s1295_s0 + $0x88] sm:$0xff]  ;;  %v38_v13 = vld [vmem:[%s1295_s0 + $0x80] sm:$0xff]  ;;  %v33_v16 = vld [vmem:[%s1295_s0 + $0x58] sm:$0xff] }
   0x4   :  { %88 = vadd.xlane.f32.xlu0 %v87_v4  ;;  %v138_v14 = vsel %vm19_vm0, %v39_v12, 0.0  ;;  %v135_v15 = vsel %vm19_vm0, %v38_v13, 0.0  ;;  %v25_v17 = vld [vmem:[%s1295_s0 + $0x18] sm:$0xff]  ;;  %v120_v18 = vsel %vm19_vm0, %v33_v16, 0.0  ;;  %v46_v20 = vld [vmem:[%s1295_s0 + $0xc0] sm:$0xff]  ;;  %v40_v21 = vld [vmem:[%s1295_s0 + $0x90] sm:$0xff] }
   0x5   :  { %v96_v19 = vsel %vm19_vm0, %v25_v17, 0.0  ;;  %v159_v22 = vsel %vm19_vm0, %v46_v20, 0.0  ;;  %v141_v23 = vsel %vm19_vm0, %v40_v21, 0.0  ;;  %v26_v24 = vld [vmem:[%s1295_s0 + $0x20] sm:$0xff]  ;;  %v47_v25 = vld [vmem:[%s1295_s0 + $0xc8] sm:$0xff]  ;;  %v41_v28 = vld [vmem:[%s1295_s0 + $0x98] sm:$0xff] }
   0x6   :  { %v99_v26 = vsel %vm19_vm0, %v26_v24, 0.0  ;;  %v162_v27 = vsel %vm19_vm0, %v47_v25, 0.0  ;;  %v34_v29 = vld [vmem:[%s1295_s0 + $0x60] sm:$0xff]  ;;  %v144_v30 = vsel %vm19_vm0, %v41_v28, 0.0  ;;  %v48_v33 = vld [vmem:[%s1295_s0 + $0xd0] sm:$0xff]  ;;  %v27_v36 = vld [vmem:[%s1295_s0 + $0x28] sm:$0xff] }
   0x7   :  { %115 = vadd.xlane.f32.xlu1 %v114_v6  ;;  %v123_v31 = vsel %vm19_vm0, %v34_v29, 0.0  ;;  %v54_v32 = vld [vmem:[%s1295_s0 + $0x100] sm:$0xff]  ;;  %v165_v35 = vsel %vm19_vm0, %v48_v33, 0.0  ;;  %v55_v37 = vld [vmem:[%s1295_s0 + $0x108] sm:$0xff]  ;;  %v102_v38 = vsel %vm19_vm0, %v27_v36, 0.0  ;;  %v56_v44 = vld [vmem:[%s1295_s0 + $0x110] sm:$0xff] }
   0x8   :  { %91 = vadd.xlane.f32.xlu0 %v90_v7  ;;  %v183_v34 = vsel %vm19_vm0, %v54_v32, 0.0  ;;  %v186_v39 = vsel %vm19_vm0, %v55_v37, 0.0  ;;  %v42_v40 = vld [vmem:[%s1295_s0 + $0xa0] sm:$0xff]  ;;  %v35_v41 = vld [vmem:[%s1295_s0 + $0x68] sm:$0xff]  ;;  %v49_v45 = vld [vmem:[%s1295_s0 + $0xd8] sm:$0xff]  ;;  %v189_v46 = vsel %vm19_vm0, %v56_v44, 0.0 }
   0x9   :  { %v147_v42 = vsel %vm19_vm0, %v42_v40, 0.0  ;;  %v126_v43 = vsel %vm19_vm0, %v35_v41, 0.0  ;;  %v168_v47 = vsel %vm19_vm0, %v49_v45, 0.0  ;;  %v63_v48 = vld [vmem:[%s1295_s0 + $0x148] sm:$0xff]  ;;  %v62_v49 = vld [vmem:[%s1295_s0 + $0x140] sm:$0xff]  ;;  %v36_v52 = vld [vmem:[%s1295_s0 + $0x70] sm:$0xff] }
   0xa   :  { %v210_v50 = vsel %vm19_vm0, %v63_v48, 0.0  ;;  %v207_v51 = vsel %vm19_vm0, %v62_v49, 0.0  ;;  %v28_v53 = vld [vmem:[%s1295_s0 + $0x30] sm:$0xff]  ;;  %v129_v54 = vsel %vm19_vm0, %v36_v52, 0.0  ;;  %v50_v56 = vld [vmem:[%s1295_s0 + $0xe0] sm:$0xff]  ;;  %v43_v57 = vld [vmem:[%s1295_s0 + $0xa8] sm:$0xff] }
   0xb   :  { %118 = vadd.xlane.f32.xlu1 %v117_v10  ;;  %v105_v55 = vsel %vm19_vm0, %v28_v53, 0.0  ;;  %v171_v58 = vsel %vm19_vm0, %v50_v56, 0.0  ;;  %v150_v59 = vsel %vm19_vm0, %v43_v57, 0.0  ;;  %v64_v60 = vld [vmem:[%s1295_s0 + $0x150] sm:$0xff]  ;;  %v57_v61 = vld [vmem:[%s1295_s0 + $0x118] sm:$0xff]  ;;  %v71_v0 = vld [vmem:[%s1295_s0 + $0x188] sm:$0xff] }
   0xc   :  { %94 = vadd.xlane.f32.xlu0 %v93_v11  ;;  %v213_v62 = vsel %vm19_vm0, %v64_v60, 0.0  ;;  %v192_v63 = vsel %vm19_vm0, %v57_v61, 0.0  ;;  %v70_v1 = vld [vmem:[%s1295_s0 + $0x180] sm:$0xff]  ;;  %v234_v2 = vsel %vm19_vm0, %v71_v0, 0.0  ;;  %v37_v4 = vld [vmem:[%s1295_s0 + $0x78] sm:$0xff]  ;;  %v51_v8 = vld [vmem:[%s1295_s0 + $0xe8] sm:$0xff]  ;;  %v343_v0 = vlaneseq }
   0xd   :  { %v231_v3 = vsel %vm19_vm0, %v70_v1, 0.0  ;;  %v29_v5 = vld [vmem:[%s1295_s0 + $0x38] sm:$0xff]  ;;  %v132_v6 = vsel %vm19_vm0, %v37_v4, 0.0  ;;  %v44_v9 = vld [vmem:[%s1295_s0 + $0xb0] sm:$0xff]  ;;  %v174_v10 = vsel %vm19_vm0, %v51_v8, 0.0  ;;  %v58_v13 = vld [vmem:[%s1295_s0 + $0x120] sm:$0xff] }
   0xe   :  { %v108_v7 = vsel %vm19_vm0, %v29_v5, 0.0  ;;  %v153_v11 = vsel %vm19_vm0, %v44_v9, 0.0  ;;  %v65_v12 = vld [vmem:[%s1295_s0 + $0x158] sm:$0xff]  ;;  %v78_v16 = vld [vmem:[%s1295_s0 + $0x1c0] sm:$0xff]  ;;  %v72_v17 = vld [vmem:[%s1295_s0 + $0x190] sm:$0xff]  ;;  %v810_v1 = vmov 0.0  }
   0xf   :  { %139 = vadd.xlane.f32.xlu1 %v138_v14  ;;  %v216_v14 = vsel %vm19_vm0, %v65_v12, 0.0  ;;  %v45_v20 = vld [vmem:[%s1295_s0 + $0xb8] sm:$0xff]  ;;  %v79_v21 = vld [vmem:[%s1295_s0 + $0x1c8] sm:$0xff]  ;;  %v52_v25 = vld [vmem:[%s1295_s0 + $0xf0] sm:$0xff]  ;;  %20 = vst.msk [vmem:[#allocation2] sm:$0xff] %vm19_vm0, %v810_v1  ;;  %792 = vmatprep.subr.bf16.mxu0 %v810_v1  ;;  %vm389_vm7 = vcmask 458112  }
  0x10   :  { %136 = vadd.xlane.f32.xlu0 %v135_v15  ;;  %v195_v15 = vsel %vm19_vm0, %v58_v13, 0.0  ;;  %v59_v24 = vld [vmem:[%s1295_s0 + $0x128] sm:$0xff]  ;;  %v73_v28 = vld [vmem:[%s1295_s0 + $0x198] sm:$0xff]  ;;  %v66_v29 = vld [vmem:[%s1295_s0 + $0x160] sm:$0xff]  ;;  %800 = vmatprep.mubr.msk.bf16.mxu0 %vm811_vm2, %v810_v1  ;;  %vm396_vm8 = vcmask 523712   ;;  %vm671_vm9 = vcmask 1041409  }
  0x11   :  { %v53_v32 = vld [vmem:[%s1295_s0 + $0xf8] sm:$0xff]  ;;  %v80_v33 = vld [vmem:[%s1295_s0 + $0x1d0] sm:$0xff]  ;;  %v67_v36 = vld [vmem:[%s1295_s0 + $0x168] sm:$0xff]  ;;  %vm673_vm10 = vcmask 1042434   ;;  %vm675_vm11 = vcmask 1043459   ;;  %vm677_vm12 = vcmask 1044484  }
  0x12   :  { %v60_v37 = vld [vmem:[%s1295_s0 + $0x130] sm:$0xff]  ;;  %v81_v40 = vld [vmem:[%s1295_s0 + $0x1d8] sm:$0xff]  ;;  %v74_v41 = vld [vmem:[%s1295_s0 + $0x1a0] sm:$0xff]  ;;  %vm679_vm13 = vcmask 1045509   ;;  %vm681_vm14 = vcmask 1046534   ;;  %vm683_vm15 = vcmask 1047559  }
  0x13   :  { %121 = vadd.xlane.f32.xlu1 %v120_v18  ;;  %v255_v18 = vsel %vm19_vm0, %v78_v16, 0.0  ;;  %v68_v44 = vld [vmem:[%s1295_s0 + $0x170] sm:$0xff]  ;;  %v61_v45 = vld [vmem:[%s1295_s0 + $0x138] sm:$0xff]  ;;  %v82_v48 = vld [vmem:[%s1295_s0 + $0x1e0] sm:$0xff] }
  0x14   :  { %97 = vadd.xlane.f32.xlu0 %v96_v19  ;;  %v237_v19 = vsel %vm19_vm0, %v72_v17, 0.0  ;;  %v75_v49 = vld [vmem:[%s1295_s0 + $0x1a8] sm:$0xff]  ;;  %v76_v52 = vld [vmem:[%s1295_s0 + $0x1b0] sm:$0xff]  ;;  %v69_v53 = vld [vmem:[%s1295_s0 + $0x178] sm:$0xff] }
  0x15   :  { %v77_v56 = vld [vmem:[%s1295_s0 + $0x1b8] sm:$0xff]  ;;  %v83_v57 = vld [vmem:[%s1295_s0 + $0x1e8] sm:$0xff]  ;;  %v84_v60 = vld [vmem:[%s1295_s0 + $0x1f0] sm:$0xff] }
  0x16   :  { %v85_v61 = vld [vmem:[%s1295_s0 + $0x1f8] sm:$0xff] }
  0x17   :  { %160 = vadd.xlane.f32.xlu1 %v159_v22  ;;  %v156_v22 = vsel %vm19_vm0, %v45_v20, 0.0 }
  0x18   :  { %142 = vadd.xlane.f32.xlu0 %v141_v23  ;;  %v258_v23 = vsel %vm19_vm0, %v79_v21, 0.0 }
  0x1b   :  { %100 = vadd.xlane.f32.xlu1 %v99_v26  ;;  %v198_v26 = vsel %vm19_vm0, %v59_v24, 0.0 }
  0x1c   :  { %163 = vadd.xlane.f32.xlu0 %v162_v27  ;;  %v177_v27 = vsel %vm19_vm0, %v52_v25, 0.0 }
  0x1f   :  { %145 = vadd.xlane.f32.xlu1 %v144_v30  ;;  %v240_v30 = vsel %vm19_vm0, %v73_v28, 0.0 }
  0x20   :  { %124 = vadd.xlane.f32.xlu0 %v123_v31  ;;  %v219_v31 = vsel %vm19_vm0, %v66_v29, 0.0 }
  0x23   :  { %184 = vadd.xlane.f32.xlu1 %v183_v34  ;;  %v180_v34 = vsel %vm19_vm0, %v53_v32, 0.0 }
  0x24   :  { %166 = vadd.xlane.f32.xlu0 %v165_v35  ;;  %v261_v35 = vsel %vm19_vm0, %v80_v33, 0.0 }
  0x27   :  { %103 = vadd.xlane.f32.xlu1 %v102_v38  ;;  %v222_v38 = vsel %vm19_vm0, %v67_v36, 0.0 }
  0x28   :  { %187 = vadd.xlane.f32.xlu0 %v186_v39  ;;  %v201_v39 = vsel %vm19_vm0, %v60_v37, 0.0 }
  0x2b   :  { %148 = vadd.xlane.f32.xlu1 %v147_v42  ;;  %v264_v42 = vsel %vm19_vm0, %v81_v40, 0.0 }
  0x2c   :  { %127 = vadd.xlane.f32.xlu0 %v126_v43  ;;  %v243_v43 = vsel %vm19_vm0, %v74_v41, 0.0 }
  0x2f   :  { %190 = vadd.xlane.f32.xlu1 %v189_v46  ;;  %v225_v46 = vsel %vm19_vm0, %v68_v44, 0.0 }
  0x30   :  { %169 = vadd.xlane.f32.xlu0 %v168_v47  ;;  %v204_v47 = vsel %vm19_vm0, %v61_v45, 0.0 }
  0x33   :  { %211 = vadd.xlane.f32.xlu1 %v210_v50  ;;  %v267_v50 = vsel %vm19_vm0, %v82_v48, 0.0 }
  0x34   :  { %208 = vadd.xlane.f32.xlu0 %v207_v51  ;;  %v246_v51 = vsel %vm19_vm0, %v75_v49, 0.0 }
  0x37   :  { %130 = vadd.xlane.f32.xlu1 %v129_v54  ;;  %v249_v54 = vsel %vm19_vm0, %v76_v52, 0.0 }
  0x38   :  { %106 = vadd.xlane.f32.xlu0 %v105_v55  ;;  %v228_v55 = vsel %vm19_vm0, %v69_v53, 0.0 }
  0x3b   :  { %172 = vadd.xlane.f32.xlu1 %v171_v58  ;;  %v252_v58 = vsel %vm19_vm0, %v77_v56, 0.0 }
  0x3c   :  { %151 = vadd.xlane.f32.xlu0 %v150_v59  ;;  %v270_v59 = vsel %vm19_vm0, %v83_v57, 0.0 }
  0x3f   :  { %214 = vadd.xlane.f32.xlu1 %v213_v62  ;;  %v273_v62 = vsel %vm19_vm0, %v84_v60, 0.0 }
  0x40   :  { %193 = vadd.xlane.f32.xlu0 %v192_v63  ;;  %v276_v63 = vsel %vm19_vm0, %v85_v61, 0.0 }
  0x43   :  { %235 = vadd.xlane.f32.xlu1 %v234_v2  ;;  %v1089_v2 = vand.u32 127, %v343_v0 }
  0x44   :  { %232 = vadd.xlane.f32.xlu0 %v231_v3  ;;  %v1091_v3 = vshrl.u32 %v343_v0, 7 }
  0x45   :  { %v349_v4 = vadd.s32 4294967288, %v1089_v2  ;;  %v356_v5 = vadd.s32 4294967280, %v1089_v2  ;;  %v370_v40 = vadd.s32 4294967264, %v1089_v2 }
  0x47   :  { %133 = vadd.xlane.f32.xlu1 %v132_v6  ;;  %v806_v6 = vld [vmem:[%s1296_s1 + $0x18] sm:$0xff]  }
  0x48   :  { %109 = vadd.xlane.f32.xlu0 %v108_v7  ;;  %v1100_v7 = vsub.s32 %v1089_v2, %v1091_v3  ;;  %793 = vmatpush3.bf16.msra.mxu0 %v806_v6 }
  0x49   :  { %794 = vmatprep.subr.bf16.mxu0 %v810_v1 }
  0x4b   :  { %175 = vadd.xlane.f32.xlu1 %v174_v10  ;;  %v1103_v10 = vsub.s32 %v349_v4, %v1091_v3 }
  0x4c   :  { %154 = vadd.xlane.f32.xlu0 %v153_v11  ;;  %v807_v11 = vld [vmem:[%s1296_s1 + $0x10] sm:$0xff]  }
  0x4d   :  { %795 = vmatpush3.bf16.msra.mxu0 %v807_v11 }
  0x4e   :  { %796 = vmatprep.subr.bf16.mxu0 %v810_v1 }
  0x4f   :  { %217 = vadd.xlane.f32.xlu1 %v216_v14 }
  0x50   :  { %196 = vadd.xlane.f32.xlu0 %v195_v15  ;;  %v1110_v15 = vsub.s32 %v356_v5, %v1091_v3 }
  0x53   :  { %256 = vadd.xlane.f32.xlu1 %v255_v18 }
  0x54   :  { %238 = vadd.xlane.f32.xlu0 %v237_v19  ;;  %v808_v19 = vld [vmem:[%s1296_s1 + $0x8] sm:$0xff]  }
  0x55   :  { %797 = vmatpush3.bf16.msra.mxu0 %v808_v19 }
  0x56   :  { %798 = vmatprep.subr.bf16.mxu0 %v810_v1 }
  0x57   :  { %157 = vadd.xlane.f32.xlu1 %v156_v22 }
  0x58   :  { %259 = vadd.xlane.f32.xlu0 %v258_v23 }
  0x5b   :  { %199 = vadd.xlane.f32.xlu1 %v198_v26  ;;  %v363_v26 = vadd.s32 4294967272, %v1089_v2 }
  0x5c   :  { %178 = vadd.xlane.f32.xlu0 %v177_v27  ;;  %v809_v27 = vld [vmem:[%s1296_s1] sm:$0xff]  }
  0x5d   :  { %799 = vmatpush3.bf16.msra.mxu0 %v809_v27 }
  0x5f   :  { %241 = vadd.xlane.f32.xlu1 %v240_v30 }
  0x60   :  { %220 = vadd.xlane.f32.xlu0 %v219_v31 }
  0x63   :  { %181 = vadd.xlane.f32.xlu1 %v180_v34  ;;  %v1131_v34 = vsub.s32 %v363_v26, %v1091_v3 }
  0x64   :  { %262 = vadd.xlane.f32.xlu0 %v261_v35 }
  0x67   :  { %223 = vadd.xlane.f32.xlu1 %v222_v38 }
  0x68   :  { %202 = vadd.xlane.f32.xlu0 %v201_v39 }
  0x6b   :  { %265 = vadd.xlane.f32.xlu1 %v264_v42 }
  0x6c   :  { %244 = vadd.xlane.f32.xlu0 %v243_v43 }
  0x6f   :  { %226 = vadd.xlane.f32.xlu1 %v225_v46  ;;  %v1141_v46 = vsub.s32 %v370_v40, %v1091_v3 }
  0x70   :  { %205 = vadd.xlane.f32.xlu0 %v204_v47 }
  0x73   :  { %268 = vadd.xlane.f32.xlu1 %v267_v50 }
  0x74   :  { %247 = vadd.xlane.f32.xlu0 %v246_v51 }
  0x77   :  { %250 = vadd.xlane.f32.xlu1 %v249_v54 }
  0x78   :  { %229 = vadd.xlane.f32.xlu0 %v228_v55 }
  0x7b   :  { %253 = vadd.xlane.f32.xlu1 %v252_v58 }
  0x7c   :  { %271 = vadd.xlane.f32.xlu0 %v270_v59  ;;  %v377_v59 = vadd.s32 4294967256, %v1089_v2 }
  0x7e   :  { %v1156_v1 = vsub.s32 %v377_v59, %v1091_v3 }
  0x7f   :  { %277 = vadd.xlane.f32.xlu1 %v276_v63 }
  0x80   :  { %274 = vadd.xlane.f32.xlu0 %v273_v62 }
  0x8c   :  { %v113_v8 = vpop.xlane.xlu1 %112 }
  0x8d   :  { %v89_v9 = vpop.xlane.xlu0 %88  ;;  %v401_v12 = vrot.slane %v113_v8, %v1100_v7 }
  0x8e   :  { %v348_v16 = vrot.slane %v89_v9, %v1100_v7 }
  0x90   :  { %v116_v13 = vpop.xlane.xlu1 %115 }
  0x91   :  { %v92_v14 = vpop.xlane.xlu0 %91  ;;  %v405_v17 = vrot.slane %v116_v13, %v1103_v10 }
  0x92   :  { %v353_v18 = vrot.slane %v92_v14, %v1103_v10 }
  0x93   :  { %v406_v20 = vsel %vm354_vm1, %v405_v17, %v401_v12 }
  0x94   :  { %v355_v21 = vsel %vm354_vm1, %v353_v18, %v348_v16  ;;  %v119_v22 = vpop.xlane.xlu1 %118 }
  0x95   :  { %v95_v23 = vpop.xlane.xlu0 %94  ;;  %v410_v24 = vrot.slane %v119_v22, %v1110_v15 }
  0x96   :  { %v360_v25 = vrot.slane %v95_v23, %v1110_v15 }
  0x97   :  { %v411_v28 = vsel %vm361_vm3, %v410_v24, %v406_v20 }
  0x98   :  { %v362_v29 = vsel %vm361_vm3, %v360_v25, %v355_v21  ;;  %v140_v30 = vpop.xlane.xlu1 %139  ;;  %v384_v25 = vadd.s32 4294967248, %v1089_v2 }
  0x99   :  { %v137_v31 = vpop.xlane.xlu0 %136  ;;  %v444_v32 = vrot.slane %v140_v30, %v1103_v10 }
  0x9a   :  { %v440_v33 = vrot.slane %v137_v31, %v1100_v7 }
  0x9c   :  { %v445_v35 = vsel %vm354_vm1, %v444_v32, %v440_v33  ;;  %v122_v36 = vpop.xlane.xlu1 %121  ;;  %v1178_v32 = vsub.s32 %v384_v25, %v1091_v3 }
  0x9d   :  { %v98_v37 = vpop.xlane.xlu0 %97  ;;  %v415_v38 = vrot.slane %v122_v36, %v1131_v34 }
  0x9e   :  { %v367_v39 = vrot.slane %v98_v37, %v1131_v34 }
  0x9f   :  { %v416_v41 = vsel %vm368_vm4, %v415_v38, %v411_v28 }
  0xa0   :  { %v369_v42 = vsel %vm368_vm4, %v367_v39, %v362_v29  ;;  %v161_v43 = vpop.xlane.xlu1 %160 }
  0xa1   :  { %v143_v44 = vpop.xlane.xlu0 %142  ;;  %v479_v50 = vrot.slane %v161_v43, %v1100_v7 }
  0xa2   :  { %v449_v45 = vrot.slane %v143_v44, %v1110_v15 }
  0xa4   :  { %v450_v47 = vsel %vm361_vm3, %v449_v45, %v445_v35  ;;  %v101_v48 = vpop.xlane.xlu1 %100  ;;  %v391_v45 = vadd.s32 4294967240, %v1089_v2 }
  0xa5   :  { %v164_v49 = vpop.xlane.xlu0 %163  ;;  %v374_v51 = vrot.slane %v101_v48, %v1141_v46 }
  0xa6   :  { %v483_v52 = vrot.slane %v164_v49, %v1103_v10  ;;  %v1195_v49 = vsub.s32 %v391_v45, %v1091_v3 }
  0xa7   :  { %v376_v53 = vsel %vm375_vm5, %v374_v51, %v369_v42 }
  0xa8   :  { %v484_v54 = vsel %vm354_vm1, %v483_v52, %v479_v50  ;;  %v146_v55 = vpop.xlane.xlu1 %145 }
  0xa9   :  { %v125_v56 = vpop.xlane.xlu0 %124  ;;  %v454_v57 = vrot.slane %v146_v55, %v1131_v34 }
  0xaa   :  { %v420_v58 = vrot.slane %v125_v56, %v1141_v46 }
  0xab   :  { %v455_v60 = vsel %vm368_vm4, %v454_v57, %v450_v47 }
  0xac   :  { %v421_v61 = vsel %vm375_vm5, %v420_v58, %v416_v41  ;;  %v185_v62 = vpop.xlane.xlu1 %184 }
  0xad   :  { %v167_v63 = vpop.xlane.xlu0 %166  ;;  %v518_v8 = vrot.slane %v185_v62, %v1100_v7 }
  0xae   :  { %v488_v0 = vrot.slane %v167_v63, %v1110_v15 }
  0xb0   :  { %v489_v4 = vsel %vm361_vm3, %v488_v0, %v484_v54  ;;  %v104_v5 = vpop.xlane.xlu1 %103 }
  0xb1   :  { %v188_v6 = vpop.xlane.xlu0 %187  ;;  %v381_v9 = vrot.slane %v104_v5, %v1156_v1 }
  0xb2   :  { %v522_v11 = vrot.slane %v188_v6, %v1103_v10 }
  0xb3   :  { %v383_v12 = vsel %vm382_vm6, %v381_v9, %v376_v53 }
  0xb4   :  { %v523_v13 = vsel %vm354_vm1, %v522_v11, %v518_v8  ;;  %v149_v14 = vpop.xlane.xlu1 %148 }
  0xb5   :  { %v128_v16 = vpop.xlane.xlu0 %127  ;;  %v459_v17 = vrot.slane %v149_v14, %v1141_v46 }
  0xb6   :  { %v425_v18 = vrot.slane %v128_v16, %v1156_v1 }
  0xb7   :  { %v460_v19 = vsel %vm375_vm5, %v459_v17, %v455_v60 }
  0xb8   :  { %v426_v20 = vsel %vm382_vm6, %v425_v18, %v421_v61  ;;  %v191_v21 = vpop.xlane.xlu1 %190 }
  0xb9   :  { %v170_v22 = vpop.xlane.xlu0 %169  ;;  %v527_v23 = vrot.slane %v191_v21, %v1110_v15 }
  0xba   :  { %v493_v24 = vrot.slane %v170_v22, %v1131_v34 }
  0xbb   :  { %v1172_v26 = vsel %vm361_vm3, %v527_v23, %v523_v13 }
  0xbc   :  { %v494_v27 = vsel %vm368_vm4, %v493_v24, %v489_v4  ;;  %v212_v28 = vpop.xlane.xlu1 %211 }
  0xbd   :  { %v209_v29 = vpop.xlane.xlu0 %208  ;;  %v561_v30 = vrot.slane %v212_v28, %v1103_v10 }
  0xbe   :  { %v557_v31 = vrot.slane %v209_v29, %v1100_v7 }
  0xc0   :  { %v1181_v33 = vsel %vm354_vm1, %v561_v30, %v557_v31  ;;  %v131_v35 = vpop.xlane.xlu1 %130 }
  0xc1   :  { %v107_v36 = vpop.xlane.xlu0 %106  ;;  %v430_v37 = vrot.slane %v131_v35, %v1178_v32 }
  0xc2   :  { %v388_v38 = vrot.slane %v107_v36, %v1178_v32 }
  0xc3   :  { %v431_v39 = vsel %vm389_vm7, %v430_v37, %v426_v20 }
  0xc4   :  { %v390_v40 = vsel %vm389_vm7, %v388_v38, %v383_v12  ;;  %v173_v41 = vpop.xlane.xlu1 %172 }
  0xc5   :  { %v152_v42 = vpop.xlane.xlu0 %151  ;;  %v498_v13 = vrot.slane %v173_v41, %v1141_v46 }
  0xc6   :  { %v464_v61 = vrot.slane %v152_v42, %v1156_v1 }
  0xc8   :  { %v1187_v43 = vpop.xlane.xlu1 %214  ;;  %v465_v4 = vsel %vm382_vm6, %v464_v61, %v460_v19  ;;  %v499_v19 = vsel %vm375_vm5, %v498_v13, %v494_v27 }
  0xc9   :  { %v194_v44 = vpop.xlane.xlu0 %193 }
  0xca   :  { %v532_v31 = vrot.slane %v194_v44, %v1131_v34 }
  0xcc   :  { %v1190_v47 = vpop.xlane.xlu1 %235 }
  0xcd   :  { %v1192_v48 = vpop.xlane.xlu0 %232 }
  0xd0   :  { %v134_v50 = vpop.xlane.xlu1 %133 }
  0xd1   :  { %v110_v51 = vpop.xlane.xlu0 %109  ;;  %v435_v52 = vrot.slane %v134_v50, %v1195_v49  ;;  %v566_v50 = vrot.slane %v1187_v43, %v1110_v15  ;;  %v596_v43 = vrot.slane %v1192_v48, %v1100_v7 }
  0xd2   :  { %v395_v53 = vrot.slane %v110_v51, %v1195_v49 }
  0xd3   :  { %v436_v54 = vsel %vm396_vm8, %v435_v52, %v431_v39  ;;  %v533_v39 = vsel %vm368_vm4, %v532_v31, %v1172_v26 }
  0xd4   :  { %v397_v55 = vsel %vm396_vm8, %v395_v53, %v390_v40  ;;  %v176_v56 = vpop.xlane.xlu1 %175 }
  0xd5   :  { %v672_v2 = vsel %vm671_vm9, %v436_v54, %v397_v55  ;;  %v155_v57 = vpop.xlane.xlu0 %154  ;;  %v503_v17 = vrot.slane %v176_v56, %v1156_v1 }
  0xd6   :  { %v469_v62 = vrot.slane %v155_v57, %v1178_v32  ;;  %v567_v57 = vsel %vm361_vm3, %v566_v50, %v1181_v33 }
  0xd7   :  { %v504_v22 = vsel %vm382_vm6, %v503_v17, %v499_v19 }
  0xd8   :  { %v218_v58 = vpop.xlane.xlu1 %217  ;;  %v470_v6 = vsel %vm389_vm7, %v469_v62, %v465_v4 }
  0xd9   :  { %v197_v59 = vpop.xlane.xlu0 %196  ;;  %v571_v52 = vrot.slane %v218_v58, %v1131_v34 }
  0xda   :  { %v537_v35 = vrot.slane %v197_v59, %v1141_v46  ;;  %v600_v59 = vrot.slane %v1190_v47, %v1103_v10 }
  0xdb   :  { %v572_v61 = vsel %vm368_vm4, %v571_v52, %v567_v57 }
  0xdc   :  { %v1201_v60 = vpop.xlane.xlu1 %256  ;;  %v538_v40 = vsel %vm375_vm5, %v537_v35, %v533_v39  ;;  %v601_v48 = vsel %vm354_vm1, %v600_v59, %v596_v43 }
  0xdd   :  { %v1203_v3 = vpop.xlane.xlu0 %238 }
  0xde   :  { %v605_v62 = vrot.slane %v1203_v3, %v1110_v15 }
  0xe0   :  { %v158_v63 = vpop.xlane.xlu1 %157 }
  0xe1   :  { %v1207_v0 = vpop.xlane.xlu0 %259  ;;  %v474_v5 = vrot.slane %v158_v63, %v1195_v49 }
  0xe3   :  { %v475_v8 = vsel %vm396_vm8, %v474_v5, %v470_v6 }
  0xe4   :  { %v674_v9 = vsel %vm673_vm10, %v475_v8, %v672_v2  ;;  %v200_v11 = vpop.xlane.xlu1 %199  ;;  %v639_v8 = vrot.slane %v1207_v0, %v1103_v10 }
  0xe5   :  { %v179_v12 = vpop.xlane.xlu0 %178  ;;  %v542_v37 = vrot.slane %v200_v11, %v1156_v1  ;;  %v635_v11 = vrot.slane %v1201_v60, %v1100_v7 }
  0xe6   :  { %v508_v18 = vrot.slane %v179_v12, %v1178_v32 }
  0xe7   :  { %v543_v45 = vsel %vm382_vm6, %v542_v37, %v538_v40 }
  0xe8   :  { %v1214_v14 = vpop.xlane.xlu1 %241  ;;  %v509_v24 = vsel %vm389_vm7, %v508_v18, %v504_v22 }
  0xe9   :  { %v221_v16 = vpop.xlane.xlu0 %220  ;;  %v610_v33 = vrot.slane %v1214_v14, %v1131_v34 }
  0xea   :  { %v576_v26 = vrot.slane %v221_v16, %v1141_v46  ;;  %v606_v16 = vsel %vm361_vm3, %v605_v62, %v601_v48 }
  0xec   :  { %v182_v20 = vpop.xlane.xlu1 %181  ;;  %v577_v63 = vsel %vm375_vm5, %v576_v26, %v572_v61 }
  0xed   :  { %v1219_v21 = vpop.xlane.xlu0 %262  ;;  %v513_v23 = vrot.slane %v182_v20, %v1195_v49  ;;  %v611_v20 = vsel %vm368_vm4, %v610_v33, %v606_v16 }
  0xee   :  { %v644_v12 = vrot.slane %v1219_v21, %v1110_v15  ;;  %v640_v15 = vsel %vm354_vm1, %v639_v8, %v635_v11 }
  0xef   :  { %v514_v25 = vsel %vm396_vm8, %v513_v23, %v509_v24 }
  0xf0   :  { %v676_v28 = vsel %vm675_vm11, %v514_v25, %v674_v9  ;;  %v224_v29 = vpop.xlane.xlu1 %223  ;;  %v645_v23 = vsel %vm361_vm3, %v644_v12, %v640_v15 }
  0xf1   :  { %v203_v30 = vpop.xlane.xlu0 %202  ;;  %v581_v56 = vrot.slane %v224_v29, %v1156_v1 }
  0xf2   :  { %v547_v38 = vrot.slane %v203_v30, %v1178_v32 }
  0xf3   :  { %v582_v6 = vsel %vm382_vm6, %v581_v56, %v577_v63 }
  0xf4   :  { %v266_v27 = vpop.xlane.xlu1 %265  ;;  %v548_v51 = vsel %vm389_vm7, %v547_v38, %v543_v45 }
  0xf5   :  { %v245_v36 = vpop.xlane.xlu0 %244  ;;  %v649_v17 = vrot.slane %v266_v27, %v1131_v34 }
  0xf6   :  { %v615_v9 = vrot.slane %v245_v36, %v1141_v46  ;;  %v21_v36 = vld [vmem:[#allocation2] sm:$0xff] }
  0xf7   :  { %v650_v24 = vsel %vm368_vm4, %v649_v17, %v645_v23 }
  0xf8   :  { %v227_v41 = vpop.xlane.xlu1 %226  ;;  %v616_v21 = vsel %vm375_vm5, %v615_v9, %v611_v20 }
  0xf9   :  { %v206_v42 = vpop.xlane.xlu0 %205  ;;  %v586_v58 = vrot.slane %v227_v41, %v1178_v32 }
  0xfa   :  { %v552_v44 = vrot.slane %v206_v42, %v1195_v49 }
  0xfb   :  { %v587_v3 = vsel %vm389_vm7, %v586_v58, %v582_v6 }
  0xfc   :  { %v553_v53 = vsel %vm396_vm8, %v552_v44, %v548_v51  ;;  %v269_v55 = vpop.xlane.xlu1 %268 }
  0xfd   :  { %v678_v54 = vsel %vm677_vm12, %v553_v53, %v676_v28  ;;  %v248_v2 = vpop.xlane.xlu0 %247  ;;  %v654_v7 = vrot.slane %v269_v55, %v1141_v46 }
  0xfe   :  { %v620_v13 = vrot.slane %v248_v2, %v1156_v1 }
  0xff   :  { %v655_v46 = vsel %vm375_vm5, %v654_v7, %v650_v24 }
 0x100   :  { %v251_v4 = vpop.xlane.xlu1 %250  ;;  %v621_v34 = vsel %vm382_vm6, %v620_v13, %v616_v21 }
 0x101   :  { %v230_v5 = vpop.xlane.xlu0 %229  ;;  %v625_v10 = vrot.slane %v251_v4, %v1178_v32 }
 0x102   :  { %v591_v47 = vrot.slane %v230_v5, %v1195_v49 }
 0x103   :  { %v626_v25 = vsel %vm389_vm7, %v625_v10, %v621_v34 }
 0x104   :  { %v592_v14 = vsel %vm396_vm8, %v591_v47, %v587_v3  ;;  %v254_v18 = vpop.xlane.xlu1 %253 }
 0x105   :  { %v680_v0 = vsel %vm679_vm13, %v592_v14, %v678_v54  ;;  %v272_v19 = vpop.xlane.xlu0 %271  ;;  %v630_v60 = vrot.slane %v254_v18, %v1195_v49 }
 0x106   :  { %v659_v22 = vrot.slane %v272_v19, %v1156_v1 }
 0x107   :  { %v631_v30 = vsel %vm396_vm8, %v630_v60, %v626_v25 }
 0x108   :  { %v278_v29 = vpop.xlane.xlu1 %277  ;;  %v660_v1 = vsel %vm382_vm6, %v659_v22, %v655_v46  ;;  %v682_v37 = vsel %vm681_vm14, %v631_v30, %v680_v0 }
 0x109   :  { %v275_v28 = vpop.xlane.xlu0 %274  ;;  %v669_v35 = vrot.slane %v278_v29, %v1195_v49 }
 0x10a   :  { %v664_v31 = vrot.slane %v275_v28, %v1178_v32  ;;  %v781_v32 = vld [vmem:[%s1297_s2] ss:$0 sm:$0xff] }
 0x10c   :  { %v665_v27 = vsel %vm389_vm7, %v664_v31, %v660_v1 }
 0x10d   :  { %v670_v38 = vsel %vm396_vm8, %v669_v35, %v665_v27 }
 0x10e   :  { %v684_v39 = vsel %vm683_vm15, %v670_v38, %v682_v37 }
 0x10f   :  { %v686_v40 = vadd.f32 %v684_v39, %v21_v36 }
 0x111   :  { %687 = vst.msk [vmem:[#allocation2] sm:$0xff] %vm19_vm0, %v686_v40 }
 0x118   :  { %v691_v41 = vld [vmem:[#allocation2] sm:$0xff] }
 0x119   :  { %v692_v42 = vmul.f32 0.015625, %v691_v41 }
 0x11b   :  { %v693_v45 = vpack.c.bf16 %v692_v42, %v692_v42 }
 0x11d   :  { %801 = vmatmul.mubr.msk.bf16.vlgmr.msra.gmra.mxu0 %vm19_vm0, %v693_v45 }
 0x1dd   :  { %v770_v49 = vpop.f32.mrf.mxu0 }
 0x1de   :  { %v771_v44 = vadd.f32 %v781_v32, %v770_v49 }
 0x1df   :  { %v802_v50 = vpop.f32.mrf.mxu0 }
 0x1e0   :  { %776 = vst [vmem:[%s1298_s3] sm:$0xff] %v771_v44 }
 0x1e1   :  { %v773_v51 = vpop.f32.mrf.mxu0 }
 0x1e3   :  { %v803_v52 = vpop.f32.mrf.mxu0 }

</bundles_post_ra>
